<compile_context>
chip_gen: v7x
topology: tpu7x:2x2x1
jax: 0.10.0
libtpu: 0.0.40
codegen_flags: <defaults>
</compile_context>

<pallas_src>
import functools

import jax
import jax.numpy as jnp
from jax.experimental import pallas as pl
from jax.experimental.pallas import tpu as pltpu

# MXU operand dtype (bf16 avoids f32 multi-pass MXU emulation on v5e/v6e/v7x).
MXU_DTYPE = jnp.bfloat16


def _round_up(x, m):
    return (x + m - 1) // m * m


def _tpu_budget():
    """Per-generation (VMEM limit, max row tile). v5e/v6e: 128MiB, v7x: 64MiB."""
    vmem = 64 * 1024 * 1024
    try:
        info = pltpu.get_tpu_info()
        v = getattr(info, "vmem_capacity_bytes", None)
        if v:
            vmem = int(v)
    except Exception:
        pass
    if vmem >= 100 * 1024 * 1024:
        return 96 * 1024 * 1024, 512      # v5e / v6e: big tiles, ~roofline
    return 48 * 1024 * 1024, 256          # v7x: stay under 64 MiB physical VMEM


_VMEM_LIMIT, _TM_MAX = _tpu_budget()


def _row_tiling(m):
    tm = min(_TM_MAX, _round_up(m, 16))
    return tm, _round_up(m, tm)


# ---------------------------------------------------------------------------
# Pallas kernels
# ---------------------------------------------------------------------------
def _matmul_bn_kernel(x_ref, w_ref, scale_ref, bias_ref, o_ref, *, relu):
    acc = jnp.dot(x_ref[...], w_ref[...], preferred_element_type=jnp.float32)
    acc = acc * scale_ref[...] + bias_ref[...]            # folded BN (f32)
    if relu:
        acc = jnp.maximum(acc, 0.0)
    o_ref[...] = acc.astype(o_ref.dtype)


def _matmul_bn_res_kernel(x_ref, w_ref, scale_ref, bias_ref, res_ref, o_ref):
    acc = jnp.dot(x_ref[...], w_ref[...], preferred_element_type=jnp.float32)
    acc = acc * scale_ref[...] + bias_ref[...] + res_ref[...].astype(jnp.float32)
    o_ref[...] = jnp.maximum(acc, 0.0).astype(o_ref.dtype)   # relu(out + id)


def _conv3x3_bn_kernel(x_ref, w_ref, scale_ref, bias_ref, o_ref, *, ho, wo, relu):
    # x_ref: (1, ho+2, wo+2, cin) padded image resident in VMEM.
    # w_ref: (9, cin, cout) per-tap weights (bf16).
    # 9 shifted in-kernel matmuls == halo conv; no HBM im2col duplication.
    cin = x_ref.shape[-1]
    acc = None
    for ky in range(3):
        for kx in range(3):
            tap = x_ref[0, ky:ky + ho, kx:kx + wo, :].reshape(ho * wo, cin)
            part = jnp.dot(tap, w_ref[ky * 3 + kx],
                           preferred_element_type=jnp.float32)
            acc = part if acc is None else acc + part
    acc = acc * scale_ref[...] + bias_ref[...]
    if relu:
        acc = jnp.maximum(acc, 0.0)
    o_ref[0] = acc.astype(o_ref.dtype)


def _max3_kernel(a_ref, b_ref, c_ref, o_ref):
    o_ref[...] = jnp.maximum(jnp.maximum(a_ref[...], b_ref[...]), c_ref[...])


def _avgpool_fc_kernel(x_ref, w_ref, b_ref, o_ref, *, inv_s):
    pooled = jnp.sum(x_ref[...].astype(jnp.float32), axis=1) * inv_s
    y = jnp.dot(pooled.astype(w_ref.dtype), w_ref[...],
                preferred_element_type=jnp.float32)
    o_ref[...] = (y + b_ref[...]).astype(o_ref.dtype)     # lane-dense padded logits


# ---------------------------------------------------------------------------
# Pallas wrappers
# ---------------------------------------------------------------------------
def _fused_matmul_bn(x2d, w, scale, bias, *, residual=None, relu=True):
    """Row-tiled fused (x @ w) * scale + bias [+ residual] [ReLU]."""
    m, k = x2d.shape
    cout = w.shape[1]
    tm, m_pad = _row_tiling(m)
    if m_pad != m:
        x2d = jnp.pad(x2d, ((0, m_pad - m), (0, 0)))
        if residual is not None:
            residual = jnp.pad(residual, ((0, m_pad - m), (0, 0)))

    itm = x2d.dtype.itemsize
    # TODO(synk): on v7x, single-buffer the grid-invariant w/scale/bias specs
    # (pipeline_mode=pl.Buffered(1)) and/or add a Cout grid axis for the widest
    # layers to free VMEM headroom for larger row tiles.
    in_specs = [
        pl.BlockSpec((tm, k), lambda i: (i, 0)),        # activation row tiles
        pl.BlockSpec((k, cout), lambda i: (0, 0)),      # bf16 weights, VMEM-resident
        pl.BlockSpec((1, cout), lambda i: (0, 0)),      # folded BN scale (f32)
        pl.BlockSpec((1, cout), lambda i: (0, 0)),      # folded BN bias  (f32)
    ]
    args = [x2d, w, scale, bias]
    res_bytes = 0
    if residual is None:
        kernel = functools.partial(_matmul_bn_kernel, relu=relu)
    else:
        in_specs.append(pl.BlockSpec((tm, cout), lambda i: (i, 0)))
        args.append(residual)
        kernel = _matmul_bn_res_kernel
        res_bytes = residual.dtype.itemsize * m_pad * cout

    cost = pl.CostEstimate(
        flops=2 * m_pad * k * cout + 3 * m_pad * cout,
        transcendentals=0,
        bytes_accessed=(itm * m_pad * k + w.dtype.itemsize * k * cout
                        + 4 * 2 * cout + itm * m_pad * cout + res_bytes))
    out = pl.pallas_call(
        kernel,
        out_shape=jax.ShapeDtypeStruct((m_pad, cout), MXU_DTYPE),
        grid_spec=pltpu.PrefetchScalarGridSpec(
            num_scalar_prefetch=0,
            grid=(m_pad // tm,),
            in_specs=in_specs,
            out_specs=pl.BlockSpec((tm, cout), lambda i: (i, 0)),
        ),
        compiler_params=pltpu.CompilerParams(
            dimension_semantics=("parallel",),
            vmem_limit_bytes=_VMEM_LIMIT),
        cost_estimate=cost,
    )(*args)
    return out[:m]


def conv3x3_s1_bn(x_nhwc, p):
    """3x3 / stride-1 conv + folded BN + ReLU via in-kernel halo conv."""
    n, h, w, cin = x_nhwc.shape
    cout = p['w'].shape[-1]
    wo = _round_up(w, 16)                       # sublane-aligned (h, wo) flatten
    xp = jnp.pad(x_nhwc, ((0, 0), (1, 1), (1, wo - w + 1), (0, 0)))
    hp, wp = h + 2, wo + 2

    kernel = functools.partial(_conv3x3_bn_kernel, ho=h, wo=wo, relu=True)
    cost = pl.CostEstimate(
        flops=2 * n * h * wo * 9 * cin * cout,
        transcendentals=0,
        bytes_accessed=(xp.dtype.itemsize * n * hp * wp * cin
                        + p['w'].dtype.itemsize * 9 * cin * cout
                        + 4 * 2 * cout
                        + xp.dtype.itemsize * n * h * wo * cout))
    out = pl.pallas_call(
        kernel,
        out_shape=jax.ShapeDtypeStruct((n, h * wo, cout), MXU_DTYPE),
        grid_spec=pltpu.PrefetchScalarGridSpec(
            num_scalar_prefetch=0,
            grid=(n,),
            in_specs=[pl.BlockSpec((1, hp, wp, cin), lambda i: (i, 0, 0, 0)),
                      pl.BlockSpec((9, cin, cout), lambda i: (0, 0, 0)),
                      pl.BlockSpec((1, cout), lambda i: (0, 0)),
                      pl.BlockSpec((1, cout), lambda i: (0, 0))],
            out_specs=pl.BlockSpec((1, h * wo, cout), lambda i: (i, 0, 0)),
        ),
        compiler_params=pltpu.CompilerParams(
            dimension_semantics=("parallel",),
            vmem_limit_bytes=_VMEM_LIMIT),
        cost_estimate=cost,
    )(xp, p['w'], p['scale'], p['bias'])
    return out.reshape(n, h, wo, cout)[:, :, :w, :]


def _im2col(x_nhwc, k, stride, pad):
    """Wrapper-side layout glue: (ky, kx, cin)-ordered conv patches."""
    n, h, w, c = x_nhwc.shape
    ho = (h + 2 * pad - k) // stride + 1
    wo = (w + 2 * pad - k) // stride + 1
    xp = jnp.pad(x_nhwc, ((0, 0), (pad, pad), (pad, pad), (0, 0)))
    cols = []
    for ky in range(k):
        for kx in range(k):
            cols.append(xp[:, ky:ky + stride * ho:stride,
                           kx:kx + stride * wo:stride, :])
    patches = jnp.concatenate(cols, axis=-1)
    return patches.reshape(n * ho * wo, k * k * c), ho, wo


def conv_im2col_bn(x_nhwc, p, *, k, stride, pad, relu=True):
    # TODO(synk): only the 7x7 stem (Cin=3) and the three stride-2 3x3 convs
    # still use wrapper-side im2col; a space-to-depth + 2x2 halo kernel would
    # remove the remaining patch duplication for the strided convs.
    n = x_nhwc.shape[0]
    patches, ho, wo = _im2col(x_nhwc, k, stride, pad)
    k_rows = p['w'].shape[0]
    if patches.shape[1] < k_rows:               # stem: K 147 -> 256 (lane dense)
        patches = jnp.pad(patches, ((0, 0), (0, k_rows - patches.shape[1])))
    cout = p['w'].shape[1]
    out2d = _fused_matmul_bn(patches, p['w'], p['scale'], p['bias'], relu=relu)
    return out2d.reshape(n, ho, wo, cout)


def conv1x1_bn(x_nhwc, p, *, relu=True, residual=None, stride=1):
    if stride != 1:
        x_nhwc = x_nhwc[:, ::stride, ::stride, :]
    n, h, w, c = x_nhwc.shape
    cout = p['w'].shape[1]
    x2d = x_nhwc.reshape(n * h * w, c)
    res2d = None
    if residual is not None:                    # residual path always ends in ReLU
        res2d = residual.reshape(n * h * w, cout)
    out2d = _fused_matmul_bn(x2d, p['w'], p['scale'], p['bias'],
                             residual=res2d, relu=relu)
    return out2d.reshape(n, h, w, cout)


def _max3(a, b, c):
    shape = a.shape
    ch = shape[-1]
    m = a.size // ch
    a2, b2, c2 = a.reshape(m, ch), b.reshape(m, ch), c.reshape(m, ch)
    tm, m_pad = _row_tiling(m)
    if m_pad != m:
        padding = ((0, m_pad - m), (0, 0))
        a2, b2, c2 = (jnp.pad(t, padding) for t in (a2, b2, c2))
    out = pl.pallas_call(
        _max3_kernel,
        out_shape=jax.ShapeDtypeStruct((m_pad, ch), a.dtype),
        grid_spec=pltpu.PrefetchScalarGridSpec(
            num_scalar_prefetch=0,
            grid=(m_pad // tm,),
            in_specs=[pl.BlockSpec((tm, ch), lambda i: (i, 0)),
                      pl.BlockSpec((tm, ch), lambda i: (i, 0)),
                      pl.BlockSpec((tm, ch), lambda i: (i, 0))],
            out_specs=pl.BlockSpec((tm, ch), lambda i: (i, 0)),
        ),
        compiler_params=pltpu.CompilerParams(
            dimension_semantics=("parallel",),
            vmem_limit_bytes=_VMEM_LIMIT),
    )(a2, b2, c2)
    return out[:m].reshape(shape)


def maxpool_3x3_s2(x_nhwc):
    """Separable 3x3/s2 max pool: width pass then height pass (3 taps each).

    No (9, M, C) tap stack in HBM; the strided tap views are cheap wrapper
    slices and each pass is one lane-dense (C=128) Pallas kernel.
    """
    n, h, w, c = x_nhwc.shape
    ho = (h + 2 - 3) // 2 + 1
    wo = (w + 2 - 3) // 2 + 1
    neg = jnp.finfo(x_nhwc.dtype).min
    xp = jnp.pad(x_nhwc, ((0, 0), (0, 0), (1, 1), (0, 0)), constant_values=neg)
    t = _max3(xp[:, :, 0:2 * wo:2, :],
              xp[:, :, 1:1 + 2 * wo:2, :],
              xp[:, :, 2:2 + 2 * wo:2, :])              # (n, h, wo, c)
    tp = jnp.pad(t, ((0, 0), (1, 1), (0, 0), (0, 0)), constant_values=neg)
    return _max3(tp[:, 0:2 * ho:2, :, :],
                 tp[:, 1:1 + 2 * ho:2, :, :],
                 tp[:, 2:2 + 2 * ho:2, :, :])           # (n, ho, wo, c)


def avgpool_fc(x_nhwc, p, *, num_classes):
    n, h, w, c = x_nhwc.shape
    s = h * w
    x3 = x_nhwc.reshape(n, s, c)
    n_pad = _round_up(n, 8)
    if n_pad != n:
        x3 = jnp.pad(x3, ((0, n_pad - n), (0, 0), (0, 0)))
    cpad = p['w'].shape[1]                       # classes padded to 128 lanes
    cost = pl.CostEstimate(
        flops=2 * n_pad * c * cpad + n_pad * s * c,
        transcendentals=0,
        bytes_accessed=(x3.dtype.itemsize * n_pad * s * c
                        + p['w'].dtype.itemsize * c * cpad
                        + 4 * cpad + 4 * n_pad * cpad))
    out = pl.pallas_call(
        functools.partial(_avgpool_fc_kernel, inv_s=1.0 / s),
        out_shape=jax.ShapeDtypeStruct((n_pad, cpad), jnp.float32),
        grid_spec=pltpu.PrefetchScalarGridSpec(
            num_scalar_prefetch=0,
            grid=(1,),
            in_specs=[pl.BlockSpec((n_pad, s, c), lambda i: (0, 0, 0)),
                      pl.BlockSpec((c, cpad), lambda i: (0, 0)),
                      pl.BlockSpec((1, cpad), lambda i: (0, 0))],
            out_specs=pl.BlockSpec((n_pad, cpad), lambda i: (0, 0)),
        ),
        compiler_params=pltpu.CompilerParams(
            dimension_semantics=("arbitrary",),
            vmem_limit_bytes=_VMEM_LIMIT),
        cost_estimate=cost,
    )(x3, p['w'], p['b'])
    return out[:n, :num_classes]


# ---------------------------------------------------------------------------
# Parameter construction: BN folded, weights pre-transposed & pre-cast to bf16,
# Cin/Cout padded to 128 lanes (padded scale/bias columns stay exactly 0 so
# padded channels never pollute downstream layers / residual adds).
# ---------------------------------------------------------------------------
def _fold_bn(key, cout, eps=1e-5):
    kg, kb, km, kv = jax.random.split(key, 4)
    gamma = 1.0 + 0.1 * jax.random.normal(kg, (cout,), jnp.float32)
    beta = 0.1 * jax.random.normal(kb, (cout,), jnp.float32)
    mean = 0.1 * jax.random.normal(km, (cout,), jnp.float32)
    var = 1.0 + 0.1 * jnp.abs(jax.random.normal(kv, (cout,), jnp.float32))
    scale = gamma / jnp.sqrt(var + eps)          # eval-mode BN folded
    bias = beta - mean * scale
    return scale, bias


def _make_conv_bn_params(key, cin, cout, k, *, mode, cin_act=None):
    """mode='mm'  -> (K_pad, Cout_pad) matmul weights (1x1 / im2col convs)
       mode='tap' -> (k*k, Cin_act, Cout_pad) per-tap weights (halo 3x3)."""
    kw, kbn = jax.random.split(key)
    fan_in = cin * k * k
    w = jax.random.normal(kw, (cout, cin, k, k), jnp.float32) * jnp.sqrt(2.0 / fan_in)
    scale, bias = _fold_bn(kbn, cout)
    if cin_act is None:
        cin_act = cin
    cout_p = _round_up(cout, 128)
    w_hwio = jnp.transpose(w, (2, 3, 1, 0))                    # (k, k, cin, cout)
    w_taps = jnp.zeros((k * k, cin_act, cout_p), jnp.float32)
    w_taps = w_taps.at[:, :cin, :cout].set(w_hwio.reshape(k * k, cin, cout))
    if mode == 'tap':
        w_kernel = w_taps.astype(MXU_DTYPE)
    else:
        w2d = w_taps.reshape(k * k * cin_act, cout_p)
        k_pad = _round_up(k * k * cin_act, 128)
        if k_pad != w2d.shape[0]:
            w2d = jnp.pad(w2d, ((0, k_pad - w2d.shape[0]), (0, 0)))
        w_kernel = w2d.astype(MXU_DTYPE)
    scale_p = jnp.zeros((1, cout_p), jnp.float32).at[0, :cout].set(scale)
    bias_p = jnp.zeros((1, cout_p), jnp.float32).at[0, :cout].set(bias)
    kernel_p = {'w': w_kernel, 'scale': scale_p, 'bias': bias_p}
    ref_p = {'w_hwio': w_hwio, 'scale': scale, 'bias': bias}
    return kernel_p, ref_p


def _make_fc_params(key, cin, num_classes):
    kw, kb = jax.random.split(key)
    w = jax.random.normal(kw, (num_classes, cin), jnp.float32) / jnp.sqrt(cin)
    b = 0.01 * jax.random.normal(kb, (num_classes,), jnp.float32)
    cpad = _round_up(num_classes, 128)           # lane-dense logits slab
    w_pad = jnp.zeros((cin, cpad), jnp.float32).at[:, :num_classes].set(w.T)
    b_pad = jnp.zeros((1, cpad), jnp.float32).at[:, :num_classes].set(b)
    return {'w': w_pad.astype(MXU_DTYPE), 'b': b_pad}, {'w': w, 'b': b}


def _block_stride(stage_idx, block_idx):
    return (1 if stage_idx == 0 else 2) if block_idx == 0 else 1


def _cpad(c):
    return _round_up(c, 128)


def init_resnet(key, *, num_classes, layers, width=64):
    expansion = 4
    params, ref = {}, {}
    key, ks = jax.random.split(key)
    params['stem'], ref['stem'] = _make_conv_bn_params(ks, 3, width, 7,
                                                       mode='mm', cin_act=3)
    inplanes = width
    params['stages'], ref['stages'] = [], []
    for stage_idx, nblocks in enumerate(layers):
        planes = width * (2 ** stage_idx)
        stage_p, stage_r = [], []
        for b in range(nblocks):
            key, k1, k2, k3, k4 = jax.random.split(key, 5)
            stride = _block_stride(stage_idx, b)
            blk_p, blk_r = {}, {}
            blk_p['conv1'], blk_r['conv1'] = _make_conv_bn_params(
                k1, inplanes, planes, 1, mode='mm', cin_act=_cpad(inplanes))
            conv2_mode = 'tap' if stride == 1 else 'mm'
            blk_p['conv2'], blk_r['conv2'] = _make_conv_bn_params(
                k2, planes, planes, 3, mode=conv2_mode, cin_act=_cpad(planes))
            blk_p['conv3'], blk_r['conv3'] = _make_conv_bn_params(
                k3, planes, planes * expansion, 1, mode='mm',
                cin_act=_cpad(planes))
            if b == 0 and (stride != 1 or inplanes != planes * expansion):
                blk_p['downsample'], blk_r['downsample'] = _make_conv_bn_params(
                    k4, inplanes, planes * expansion, 1, mode='mm',
                    cin_act=_cpad(inplanes))
            stage_p.append(blk_p)
            stage_r.append(blk_r)
            inplanes = planes * expansion
        params['stages'].append(stage_p)
        ref['stages'].append(stage_r)
    key, kf = jax.random.split(key)
    params['fc'], ref['fc'] = _make_fc_params(kf, inplanes, num_classes)
    return params, ref


# ---------------------------------------------------------------------------
# Forward pass (Pallas) and pure-JAX reference
# ---------------------------------------------------------------------------
def resnet_forward(params, x_nchw, *, num_classes):
    x = jnp.transpose(x_nchw, (0, 2, 3, 1)).astype(MXU_DTYPE)  # NHWC, bf16 acts
    x = conv_im2col_bn(x, params['stem'], k=7, stride=2, pad=3, relu=True)
    x = maxpool_3x3_s2(x)
    for si, stage in enumerate(params['stages']):
        for bi, blk in enumerate(stage):
            stride = _block_stride(si, bi)
            identity = x
            out = conv1x1_bn(x, blk['conv1'], relu=True)
            if stride == 1:
                out = conv3x3_s1_bn(out, blk['conv2'])
            else:
                out = conv_im2col_bn(out, blk['conv2'], k=3, stride=stride,
                                     pad=1, relu=True)
            if 'downsample' in blk:
                identity = conv1x1_bn(x, blk['downsample'], relu=False,
                                      stride=stride)
            x = conv1x1_bn(out, blk['conv3'], residual=identity)
    return avgpool_fc(x, params['fc'], num_classes=num_classes)


def _ref_conv_bn(x, p, *, stride, pad, relu=True, residual=None):
    y = jax.lax.conv_general_dilated(
        x, p['w_hwio'], window_strides=(stride, stride),
        padding=[(pad, pad), (pad, pad)],
        dimension_numbers=('NHWC', 'HWIO', 'NHWC'),
        precision=jax.lax.Precision.HIGHEST)
    y = y * p['scale'] + p['bias']
    if residual is not None:
        y = y + residual
    if relu:
        y = jnp.maximum(y, 0.0)
    return y


def ref_forward(ref_params, x_nchw):
    x = jnp.transpose(x_nchw, (0, 2, 3, 1))
    x = _ref_conv_bn(x, ref_params['stem'], stride=2, pad=3)
    x = jax.lax.reduce_window(x, -jnp.inf, jax.lax.max,
                              (1, 3, 3, 1), (1, 2, 2, 1),
                              ((0, 0), (1, 1), (1, 1), (0, 0)))
    for si, stage in enumerate(ref_params['stages']):
        for bi, blk in enumerate(stage):
            stride = _block_stride(si, bi)
            identity = x
            out = _ref_conv_bn(x, blk['conv1'], stride=1, pad=0)
            out = _ref_conv_bn(out, blk['conv2'], stride=stride, pad=1)
            if 'downsample' in blk:
                identity = _ref_conv_bn(x, blk['downsample'], stride=stride,
                                        pad=0, relu=False)
            x = _ref_conv_bn(out, blk['conv3'], stride=1, pad=0,
                             residual=identity)
    pooled = jnp.mean(x, axis=(1, 2))
    return jnp.dot(pooled, ref_params['fc']['w'].T,
                   precision=jax.lax.Precision.HIGHEST) + ref_params['fc']['b']


if __name__ == "__main__":
    NUM_CLASSES = 10
    # TODO(synk): resnet152 uses layers=(3, 8, 36, 3); the same bottleneck
    # architecture / kernels are instantiated at reduced depth for the demo.
    LAYERS = (2, 1, 1, 1)
    batch, chans, hh, ww = 2, 3, 64, 64

    key = jax.random.PRNGKey(0)
    kparams, kx = jax.random.split(key)
    params, ref_params = init_resnet(kparams, num_classes=NUM_CLASSES,
                                     layers=LAYERS)
    x = jax.random.normal(kx, (batch, chans, hh, ww), dtype=jnp.float32)

    out = resnet_forward(params, x, num_classes=NUM_CLASSES)
    jax.block_until_ready(out)
    assert out.shape == (batch, NUM_CLASSES), out.shape

    ref = ref_forward(ref_params, x)
    err = float(jnp.max(jnp.abs(out - ref)))
    scale = float(jnp.max(jnp.abs(ref)))
    # bf16 MXU operands / bf16 activations vs. f32 HIGHEST-precision reference:
    # scale-aware tolerance.
    assert err <= 0.1 + 0.05 * scale, (err, scale)

    print("KERNEL_OK")
</pallas_src>

<mosaic_0001>
module attributes {stable_mosaic.version = 11 : i64} {
  func.func @_matmul_bn_kernel(%arg0: i32, %arg1: memref<256x256xbf16, #tpu.memory_space<vmem>>, %arg2: memref<256x128xbf16, #tpu.memory_space<vmem>>, %arg3: memref<1x128xf32, #tpu.memory_space<vmem>>, %arg4: memref<1x128xf32, #tpu.memory_space<vmem>>, %arg5: memref<256x128xbf16, #tpu.memory_space<vmem>>) attributes {dimension_semantics = [#tpu.dimension_semantics<parallel>], iteration_bounds = array<i64: 8>, scalar_prefetch = 0 : i64, scratch_operands = 0 : i64, tpu.core_type = #tpu.core_type<tc>, window_params = [{transform_indices = @transform_0, window_bounds = array<i64: 256, 256>}, {pipeline_mode = #tpu.pipeline_mode<synchronous>, transform_indices = @transform_1, window_bounds = array<i64: 256, 128>}, {pipeline_mode = #tpu.pipeline_mode<synchronous>, transform_indices = @transform_2, window_bounds = array<i64: 1, 128>}, {pipeline_mode = #tpu.pipeline_mode<synchronous>, transform_indices = @transform_3, window_bounds = array<i64: 1, 128>}, {transform_indices = @transform_4, window_bounds = array<i64: 256, 128>}]} {
    %c0 = arith.constant 0 : index
    %c0_0 = arith.constant 0 : index
    %0 = vector.load %arg1[%c0, %c0_0] : memref<256x256xbf16, #tpu.memory_space<vmem>>, vector<256x256xbf16>
    %c0_1 = arith.constant 0 : index
    %c0_2 = arith.constant 0 : index
    %1 = vector.load %arg2[%c0_1, %c0_2] : memref<256x128xbf16, #tpu.memory_space<vmem>>, vector<256x128xbf16>
    %cst = arith.constant dense<0.000000e+00> : vector<256x128xf32>
    %2 = tpu.matmul %0, %1, %cst {dimension_numbers = #tpu.dot_dimension_numbers<[1], [0], [0], [1], [0, 0, 1, 1], [], []>} : vector<256x256xbf16>, vector<256x128xbf16>, vector<256x128xf32> -> vector<256x128xf32>
    %c0_3 = arith.constant 0 : index
    %c0_4 = arith.constant 0 : index
    %3 = vector.load %arg3[%c0_3, %c0_4] : memref<1x128xf32, #tpu.memory_space<vmem>>, vector<1x128xf32>
    %4 = vector.broadcast %3 : vector<1x128xf32> to vector<256x128xf32>
    %5 = arith.mulf %2, %4 : vector<256x128xf32>
    %c0_5 = arith.constant 0 : index
    %c0_6 = arith.constant 0 : index
    %6 = vector.load %arg4[%c0_5, %c0_6] : memref<1x128xf32, #tpu.memory_space<vmem>>, vector<1x128xf32>
    %7 = vector.broadcast %6 : vector<1x128xf32> to vector<256x128xf32>
    %8 = arith.addf %5, %7 : vector<256x128xf32>
    %cst_7 = arith.constant 0.000000e+00 : f32
    %9 = vector.broadcast %cst_7 : f32 to vector<256x128xf32>
    %10 = arith.maximumf %8, %9 : vector<256x128xf32>
    %11 = arith.truncf %10 : vector<256x128xf32> to vector<256x128xbf16>
    %c0_8 = arith.constant 0 : index
    %c0_9 = arith.constant 0 : index
    %12 = vector.load %arg5[%c0_8, %c0_9] : memref<256x128xbf16, #tpu.memory_space<vmem>>, vector<256x128xbf16>
    tpu.vector_store %arg5[%c0_8, %c0_9], %11 {strides = array<i32>} : memref<256x128xbf16, #tpu.memory_space<vmem>>, vector<256x128xbf16>,
    return
  }
  func.func @transform_0(%arg0: i32) -> (i32, i32) {
    %c0_i32 = arith.constant 0 : i32
    %c0_i32_0 = arith.constant 0 : i32
    return %arg0, %c0_i32 : i32, i32
  }
  func.func @transform_1(%arg0: i32) -> (i32, i32) {
    %c0_i32 = arith.constant 0 : i32
    %c0_i32_0 = arith.constant 0 : i32
    %c0_i32_1 = arith.constant 0 : i32
    return %c0_i32, %c0_i32_0 : i32, i32
  }
  func.func @transform_2(%arg0: i32) -> (i32, i32) {
    %c0_i32 = arith.constant 0 : i32
    %c0_i32_0 = arith.constant 0 : i32
    %c0_i32_1 = arith.constant 0 : i32
    return %c0_i32, %c0_i32_0 : i32, i32
  }
  func.func @transform_3(%arg0: i32) -> (i32, i32) {
    %c0_i32 = arith.constant 0 : i32
    %c0_i32_0 = arith.constant 0 : i32
    %c0_i32_1 = arith.constant 0 : i32
    return %c0_i32, %c0_i32_0 : i32, i32
  }
  func.func @transform_4(%arg0: i32) -> (i32, i32) {
    %c0_i32 = arith.constant 0 : i32
    %c0_i32_0 = arith.constant 0 : i32
    return %arg0, %c0_i32 : i32, i32
  }
}

</mosaic_0001>

<bundles_post_ra>
// kernel: tpu_custom_call.1
= control target key start
LH: loop header
LB: loop body
LE: loop exit
PB: predicated region body
PF: predicated region fallthrough
CT: control target
= control target key end

     0   :  { %9 = vsyncpa [#allocation3], 0  ;;  %s2051_s0 = inlined_call_operand.hbm [shape: bf16[2048,256], index: 0, kind: input, shape index: {}]   ;;  %s2052_s1 = inlined_call_operand.hbm [shape: bf16[256,128], index: 1, kind: input, shape index: {}]   ;;  %s2053_s2 = inlined_call_operand.vmem [shape: f32[1,128], index: 2, kind: input, shape index: {}]   ;;  %s2054_s3 = inlined_call_operand.vmem [shape: f32[1,128], index: 3, kind: input, shape index: {}]   ;;  %s2055_s4 = inlined_call_operand.hbm [shape: bf16[2048,128], index: 4, kind: output, shape index: {}]  }
   0x1   :  { %11 = vsyncpa [#allocation3 + $0x1], 0 }
   0x2   :  { %12 = vsyncpa [#allocation6], 0 }
   0x3   :  { %13 = vsyncpa [#allocation4], 0 }
   0x4   :  { %15 = vsyncpa [#allocation4 + $0x1], 0  ;;  %s1731_s15 = smov 0   ;;  %s1733_s16 = smov 0  }
   0x5   :  { %s1735_s17 = smov 0   ;;  %s1737_s18 = smov 0  }
   0x6 LB: > { %s1752_s19 = sadd.s32 4294967295, %s1695_s18   ;;  %s1083_s20 = sadd.s32 4294967294, %s1695_s18   ;;  %s1695_s18 = sphi %s1737_s18, %s2074_s18   ;;  %s1691_s17 = sphi %s1735_s17, %s2073_s17   ;;  %s1687_s16 = sphi %s1733_s16, %s2072_s16   ;;  %s1683_s15 = sphi %s1731_s15, %s2071_s15  }
   0x7   : > { %p41_p0 = scmp.ne.s32.totalorder %s1687_s16, %s1683_s15  ;;  %p2056_p1 = scmp.eq.s32.totalorder %s1752_s19, 0 }
   0x8   : > { %p134_p3 = scmp.eq.s32.totalorder %s1083_s20, 7  ;;  %p1084_p5 = scmp.ge.s32.totalorder %s1695_s18, 1 }
   0x9   : > { %p1761_p4 = por %p2056_p1, %p41_p0  ;;  %p141_p7 = scmp.lt.s32.totalorder %s1695_s18, 9 }
   0xa   : > { %p1766_p6 = por %p134_p3, %p41_p0  ;;  %s1697_s24 = smov [#allocation5]  }
   0xb   : > { %s2059_s21 = scalar_select %p1761_p4, 1, 0 }
   0xc   : > { %s2060_s22 = scalar_select %p1766_p6, 1, 0 }
   0xd   : > { %p1771_p8 = pnand %p1084_p5, %p141_p7  ;;  %s153_s25 = sshll.u32 %s1697_s24, 4  ;;  %s154_s25 = int_to_ptr.vmem [resolvable:$true] %s153_s25 }
   0xe   : > { %s1784_s27 = sadd.s32 1, %s1695_s18   ;;  %s28_s28 = sadd.s32 1, %s1691_s17 }
   0xf   : > { %s2061_s23 = scalar_select %p1771_p8, 1, 0 }
  0x10   : > { %p1448_p9 = pneg %p1771_p8  ;;  %s25_s29 = ssub.s32 %s1695_s18, %s1784_s27 }
  0x11   : > { %s1567_s6 = scalar_lea.hbm %s2052_s1, 2048 }
  0x12   : > { %p1779_p10 = pnand %p1448_p9, %p2056_p1  ;;  %p1568_p11 = scmp.ne.s32.totalorder %s2052_s1, %s1567_s6 }
  0x13   : > { %p1574_p3 = scmp.lt.u32.totalorder %s1567_s6, %s2052_s1 }
  0x14   : > { %p1569_p12 = pneg %p1779_p10 }
  0x16   : > { %p1570_p13 = pnand %p1569_p12, %p1568_p11 }
  0x18   : > { %p1571_p0 = pneg %p1570_p13 }
  0x1a   : > { %p1576_p5 = pnand %p1574_p3, %p1571_p0 }
  0x1c   : > { %1579 = shalt.err (!%p1576_p5)
}
  0x1d   : > { %s1580_s11 = scalar_lea.vmem %s154_s25, 2048  ;;  %p1588_p2 = scmp.lt.s32.totalorder %s154_s25, %s154_s25 }
  0x1e   : > { %p1581_p7 = scmp.ne.s32.totalorder %s154_s25, %s1580_s11  ;;  %p1589_p6 = scmp.lt.s32.totalorder %s1580_s11, %s1580_s11 }
  0x20   : > { %p1583_p9 = pnand %p1581_p7, %p1569_p12  ;;  %p1590_p4 = por %p1589_p6, %p1588_p2 }
  0x22   : > { %p1584_p1 = pneg %p1583_p9 }
  0x24   : > { %p1591_p8 = pnand %p1590_p4, %p1584_p1 }
  0x26   : > { %1594 = shalt.err (!%p1591_p8)
}
  0x27   : > { %s1698_s12 = smov 64   ;;  %s1699_s13 = smov 4  }
  0x28   : > { %1451 = dma.hbm_to_vmem [thread:$0]  (!%p1779_p10), %s2052_s1, 2048, %s154_s25, [#allocation6], %s1698_s12, %s1698_s12, %s1699_s13  }
  0x29   : > { %p26_p11 = scmp.eq.s32.totalorder %s25_s29, 0  ;;  %p35_p2 = scmp.ne.s32.totalorder %s1691_s17, %s1687_s16 }
  0x2a   : > { %p36_p1 = scmp.eq.s32.totalorder %s1695_s18, 0  ;;  %p1461_p4 = scmp.lt.s32.totalorder %s1695_s18, 8 }
  0x2b   : > { %s1810_s24 = scalar_select %p26_p11, %s1691_s17, %s28_s28  }
  0x2c   : > { %p37_p6 = por %p36_p1, %p35_p2  ;;  %p2063_p8 = scmp.eq.s32.totalorder %s1752_s19, 7 }
  0x2d   : > { %s173_s5 = sand.u32 1, %s1691_s17   ;;  %s1183_s6 = sshll.u32 %s1695_s18, 12 }
  0x2e   : > { %p1814_p12 = por %p2063_p8, %p35_p2  ;;  %s1087_s7 = sshll.u32 %s173_s5, 8 }
  0x2f   : > { %s1823_s9 = scalar_lea.hbm %s2051_s0, %s1183_s6  ;;  %s177_s25 = scalar_lea.vmem [#allocation2], %s1087_s7 }
  0x30   : > { %s185_s28 = sshll.u32 %s177_s25, 4  ;;  %p1825_p10 = pnand %p1461_p4, %p37_p6  ;;  %s1829_s28 = int_to_ptr.vmem [resolvable:$true] %s185_s28 }
  0x31   : > { %s1831_s10 = scalar_lea.sflag [#allocation3], %s173_s5  ;;  %s1595_s11 = scalar_lea.hbm %s1823_s9, 4096 }
  0x32   : > { %p1596_p13 = scmp.ne.s32.totalorder %s1823_s9, %s1595_s11  ;;  %p1597_p0 = pneg %p1825_p10 }
  0x33   : > { %s1600_s14 = scalar_lea.hbm %s2051_s0, 32768  ;;  %p1601_p7 = scmp.lt.u32.totalorder %s1823_s9, %s2051_s0 }
  0x34   : > { %p1598_p3 = pnand %p1597_p0, %p1596_p13  ;;  %p1602_p9 = scmp.lt.u32.totalorder %s1600_s14, %s1595_s11 }
  0x35   : > { %p1604_p2 = scmp.lt.u32.totalorder %s1595_s11, %s1823_s9 }
  0x36   : > { %p1599_p5 = pneg %p1598_p3  ;;  %p1603_p11 = por %p1602_p9, %p1601_p7 }
  0x38   : > { %p1605_p1 = por %p1604_p2, %p1603_p11 }
  0x3a   : > { %p1606_p4 = pnand %p1605_p1, %p1599_p5 }
  0x3c   : > { %1609 = shalt.err (!%p1606_p4)
}
  0x3d   : > { %s1610_s5 = scalar_lea.vmem %s1829_s28, 4096  ;;  %s1700_s7 = smov [#allocation2]  }
  0x3e   : > { %p1611_p6 = scmp.ne.s32.totalorder %s1829_s28, %s1610_s5  ;;  %s1615_s26 = sshll.u32 %s1700_s7, 4  ;;  %s1616_s26 = int_to_ptr.vmem [resolvable:$false] %s1615_s26 }
  0x3f   : > { %s1617_s8 = scalar_lea.vmem %s1616_s26, 8192  ;;  %p1618_p3 = scmp.lt.s32.totalorder %s1829_s28, %s1616_s26 }
  0x40   : > { %p1613_p8 = pnand %p1611_p6, %p1597_p0  ;;  %p1619_p7 = scmp.lt.s32.totalorder %s1617_s8, %s1610_s5 }
  0x42   : > { %p1614_p13 = pneg %p1613_p8  ;;  %p1620_p9 = por %p1619_p7, %p1618_p3 }
  0x44   : > { %p1621_p11 = pnand %p1620_p9, %p1614_p13 }
  0x46   : > { %1624 = shalt.err (!%p1621_p11)
}
  0x47   : > { %s1701_s25 = smov 128   ;;  %s1702_s11 = smov 8  }
  0x48   : > { %1455 = dma.hbm_to_vmem [thread:$0]  (!%p1825_p10), %s1823_s9, 4096, %s1829_s28, %s1831_s10, %s1701_s25, %s1701_s25, %s1702_s11  }
  0x49   : > { %p2066_p0 = scmp.ne.s32.totalorder %s2061_s23, 0 }
  0x4a   : > { %s1862_s12 = sand.u32 (!%p2066_p0), 1, %s1687_s16   ;;  %p2067_p5 = scmp.ne.s32.totalorder (!%p2066_p0), %s2059_s21, 0 }
  0x4b   : > { %197 = sbr.rel (%p2066_p0) target bundleno = 416 (0x1a0), region = 36  ;;  %s1092_s13 = sshll.u32 (!%p2066_p0), %s1862_s12, 8 }
  0x4c   : > { %s200_s14 = scalar_lea.sflag (!%p2066_p0), [#allocation3], %s1862_s12  ;;  %s1866_s20 = scalar_lea.vmem (!%p2066_p0), [#allocation2], %s1092_s13 }
  0x52   : > { %1670 = dma.done.wait (%p2067_p5), %s200_s14, 4096  }
  0x53   : > { %1672 = vsyncadd (%p2067_p5), %s200_s14, 4294963200  ;;  %p2068_p10 = scmp.eq.s32.totalorder %s1752_s19, 0 }
  0x55   : > { %1674 = dma.done.wait (%p2068_p10), [#allocation6], 2048   ;;  %p2069_p2 = pmov %p2068_p10 }
  0x56   : > { %v1503_v0 = vld [vmem:[#allocation5 + $0x40] sm:$0xff]   ;;  %v1505_v2 = vld [vmem:[#allocation5 + $0x48] sm:$0xff]   ;;  %v1507_v4 = vld [vmem:[#allocation5 + $0x50] sm:$0xff]   ;;  %s1094_s29 = sshll.u32 %s1862_s12, 7  ;;  %s1216_s6 = sshll.u32 %s1752_s19, 11 }
  0x57   : > { %1676 = vsyncadd (%p2069_p2), [#allocation6], 4294965248  ;;  %v1504_v1 = vld [vmem:[#allocation5] sm:$0xff]   ;;  %1312 = vmatprep.subr.bf16.mxu0 %v1503_v0  ;;  %1424 = vmatprep.subr.bf16.mxu1 %v1503_v0  ;;  %v1506_v3 = vld [vmem:[#allocation5 + $0x8] sm:$0xff]   ;;  %s1929_s10 = scalar_lea.vmem [#allocation7], %s1094_s29  ;;  %s2004_s8 = scalar_lea.hbm %s2055_s4, %s1216_s6 }
  0x58   : > { %1313 = vmatpush3.bf16.msra.mxu0 %v1504_v1  ;;  %1432 = vmatpush3.bf16.msra.mxu1 %v1504_v1  ;;  %v1508_v5 = vld [vmem:[#allocation5 + $0x10] sm:$0xff]   ;;  %v1509_v6 = vld [vmem:[#allocation5 + $0x58] sm:$0xff]   ;;  %v1511_v8 = vld [vmem:[#allocation5 + $0x60] sm:$0xff]   ;;  %s1000_s5 = sshll.u32 %s1929_s10, 4  ;;  %s987_s19 = scalar_lea.sflag [#allocation4], %s1862_s12  ;;  %s2006_s5 = int_to_ptr.vmem [resolvable:$true] %s1000_s5 }
  0x59   : > { %1314 = vmatprep.subr.bf16.mxu0 %v1505_v2  ;;  %1425 = vmatprep.subr.bf16.mxu1 %v1505_v2  ;;  %v1510_v7 = vld [vmem:[#allocation5 + $0x18] sm:$0xff]   ;;  %v1512_v9 = vld [vmem:[#allocation5 + $0x20] sm:$0xff]   ;;  %v1513_v10 = vld [vmem:[#allocation5 + $0x68] sm:$0xff]   ;;  %s1625_s25 = scalar_lea.vmem %s2006_s5, 2048  ;;  %s1703_s11 = smov [#allocation7]  }
  0x5a   : > { %v1521_v11 = vld [vmem:[%s1866_s20 + $0x4] ss:$8 sps:$4 sm:$0xff]   ;;  %v1515_v14 = vld [vmem:[#allocation5 + $0x70] sm:$0xff]   ;;  %v1517_v16 = vld [vmem:[#allocation5 + $0x78] sm:$0xff]   ;;  %p1626_p1 = scmp.ne.s32.totalorder %s2006_s5, %s1625_s25  ;;  %s1629_s13 = sshll.u32 %s1703_s11, 4  ;;  %s1630_s13 = int_to_ptr.vmem [resolvable:$false] %s1629_s13 }
  0x5b   : > { %v1524_v12 = vld [vmem:[%s1866_s20 + $0x84] ss:$8 sps:$4 sm:$0xff]   ;;  %587 = vmatprep.mubr.bf16.mxu0 %v1521_v11  ;;  %v1516_v15 = vld [vmem:[#allocation5 + $0x30] sm:$0xff]   ;;  %v1518_v17 = vld [vmem:[#allocation5 + $0x38] sm:$0xff]   ;;  %s1631_s14 = scalar_lea.vmem %s1630_s13, 4096  ;;  %p1632_p8 = scmp.lt.s32.totalorder %s2006_s5, %s1630_s13 }
  0x5c   : > { %1315 = vmatpush3.bf16.msra.mxu0 %v1506_v3  ;;  %1433 = vmatpush3.bf16.msra.mxu1 %v1506_v3  ;;  %v1514_v13 = vld [vmem:[#allocation5 + $0x28] sm:$0xff]   ;;  %v1525_v20 = vld [vmem:[%s1866_s20 + $0x14] ss:$8 sps:$4 sm:$0xff]   ;;  %v1529_v22 = vld [vmem:[%s1866_s20 + $0x10] ss:$8 sps:$4 sm:$0xff]   ;;  %p1627_p4 = pnand %p1626_p1, %p1814_p12  ;;  %p1633_p13 = scmp.lt.s32.totalorder %s1631_s14, %s1625_s25 }
  0x5d   : > { %1316 = vmatprep.subr.bf16.mxu0 %v1507_v4  ;;  %1426 = vmatprep.subr.bf16.mxu1 %v1507_v4  ;;  %v1519_v18 = vld [vmem:[%s1866_s20] ss:$8 sps:$4 sm:$0xff]   ;;  %v1527_v21 = vld [vmem:[%s1866_s20 + $0x94] ss:$8 sps:$4 sm:$0xff]   ;;  %v1530_v23 = vld [vmem:[%s1866_s20 + $0x90] ss:$8 sps:$4 sm:$0xff]  }
  0x5e   : > { %651 = vmatprep.mubr.bf16.mxu1 %v1524_v12  ;;  %v1522_v19 = vld [vmem:[%s1866_s20 + $0x80] ss:$8 sps:$4 sm:$0xff]   ;;  %v1531_v24 = vld [vmem:[%s1866_s20 + $0x24] ss:$8 sps:$4 sm:$0xff]   ;;  %v1537_v28 = vld [vmem:[%s1866_s20 + $0x34] ss:$8 sps:$4 sm:$0xff]   ;;  %p1628_p6 = pneg %p1627_p4  ;;  %p1634_p3 = por %p1633_p13, %p1632_p8 }
  0x5f   : > { %v1533_v25 = vld [vmem:[%s1866_s20 + $0xa4] ss:$8 sps:$4 sm:$0xff]   ;;  %v1535_v26 = vld [vmem:[%s1866_s20 + $0x20] ss:$8 sps:$4 sm:$0xff]   ;;  %v1539_v29 = vld [vmem:[%s1866_s20 + $0xb4] ss:$8 sps:$4 sm:$0xff]  }
  0x60   : > { %1317 = vmatpush3.bf16.msra.mxu0 %v1508_v5  ;;  %1434 = vmatpush3.bf16.msra.mxu1 %v1508_v5  ;;  %v1536_v27 = vld [vmem:[%s1866_s20 + $0xa0] ss:$8 sps:$4 sm:$0xff]   ;;  %v1541_v30 = vld [vmem:[%s1866_s20 + $0x30] ss:$8 sps:$4 sm:$0xff]   ;;  %v1543_v32 = vld [vmem:[%s1866_s20 + $0x44] ss:$8 sps:$4 sm:$0xff]   ;;  %p1635_p7 = pnand %p1634_p3, %p1628_p6 }
  0x61   : > { %1318 = vmatprep.subr.bf16.mxu0 %v1509_v6  ;;  %1427 = vmatprep.subr.bf16.mxu1 %v1509_v6  ;;  %v1542_v31 = vld [vmem:[%s1866_s20 + $0xb0] ss:$8 sps:$4 sm:$0xff]   ;;  %v1545_v33 = vld [vmem:[%s1866_s20 + $0xc4] ss:$8 sps:$4 sm:$0xff]   ;;  %v1547_v34 = vld [vmem:[%s1866_s20 + $0x40] ss:$8 sps:$4 sm:$0xff]  }
  0x62   : > { %v1548_v35 = vld [vmem:[%s1866_s20 + $0xc0] ss:$8 sps:$4 sm:$0xff]   ;;  %v1549_v36 = vld [vmem:[%s1866_s20 + $0x54] ss:$8 sps:$4 sm:$0xff]   ;;  %v1553_v38 = vld [vmem:[%s1866_s20 + $0x50] ss:$8 sps:$4 sm:$0xff]  }
  0x63   : > { %v1551_v37 = vld [vmem:[%s1866_s20 + $0xd4] ss:$8 sps:$4 sm:$0xff]   ;;  %v1554_v39 = vld [vmem:[%s1866_s20 + $0xd0] ss:$8 sps:$4 sm:$0xff]   ;;  %v1555_v40 = vld [vmem:[%s1866_s20 + $0x64] ss:$8 sps:$4 sm:$0xff]  }
  0x64   : > { %1319 = vmatpush3.bf16.msra.mxu0 %v1510_v7  ;;  %1435 = vmatpush3.bf16.msra.mxu1 %v1510_v7  ;;  %v1557_v41 = vld [vmem:[%s1866_s20 + $0xe4] ss:$8 sps:$4 sm:$0xff]   ;;  %v1559_v42 = vld [vmem:[%s1866_s20 + $0x60] ss:$8 sps:$4 sm:$0xff]   ;;  %v1561_v44 = vld [vmem:[%s1866_s20 + $0x74] ss:$8 sps:$4 sm:$0xff]  }
  0x65   : > { %1320 = vmatprep.subr.bf16.mxu0 %v1511_v8  ;;  %1428 = vmatprep.subr.bf16.mxu1 %v1511_v8  ;;  %v1560_v43 = vld [vmem:[%s1866_s20 + $0xe0] ss:$8 sps:$4 sm:$0xff]   ;;  %v1563_v45 = vld [vmem:[%s1866_s20 + $0xf4] ss:$8 sps:$4 sm:$0xff]   ;;  %v1565_v46 = vld [vmem:[%s1866_s20 + $0x70] ss:$8 sps:$4 sm:$0xff]  }
  0x66   : > { %v1566_v47 = vld [vmem:[%s1866_s20 + $0xf0] ss:$8 sps:$4 sm:$0xff]   ;;  %v1911_v51 = vld [vmem:[%s2053_s2] ss:$0 sm:$0xff] }
  0x67   : > { %v1916_v57 = vld [vmem:[%s2054_s3] ss:$0 sm:$0xff] }
  0x68   : > { %1321 = vmatpush3.bf16.msra.mxu0 %v1512_v9  ;;  %1436 = vmatpush3.bf16.msra.mxu1 %v1512_v9 }
  0x69   : > { %1322 = vmatprep.subr.bf16.mxu0 %v1513_v10  ;;  %1429 = vmatprep.subr.bf16.mxu1 %v1513_v10 }
  0x6c   : > { %1323 = vmatpush3.bf16.msra.mxu0 %v1514_v13  ;;  %1437 = vmatpush3.bf16.msra.mxu1 %v1514_v13 }
  0x6d   : > { %1324 = vmatprep.subr.bf16.mxu0 %v1515_v14  ;;  %1430 = vmatprep.subr.bf16.mxu1 %v1515_v14 }
  0x70   : > { %1325 = vmatpush3.bf16.msra.mxu0 %v1516_v15  ;;  %1438 = vmatpush3.bf16.msra.mxu1 %v1516_v15 }
  0x71   : > { %1326 = vmatprep.subr.bf16.mxu0 %v1517_v16  ;;  %1431 = vmatprep.subr.bf16.mxu1 %v1517_v16 }
  0x74   : > { %1327 = vmatpush3.bf16.msra.mxu0 %v1518_v17  ;;  %1439 = vmatpush3.bf16.msra.mxu1 %v1518_v17 }
  0x77   : > { %588 = vmatmul.mubr.bf16.vlgmr.msra.gmra.mrb[0].mxu0 %v1519_v18  ;;  %652 = vmatmul.mubr.bf16.vlgmr.msra.gmra.mrb[0].mxu1 %v1522_v19 }
  0x78   : > { %595 = vmatprep.mubr.bf16.mxu0 %v1525_v20  ;;  %659 = vmatprep.mubr.bf16.mxu1 %v1527_v21 }
  0x7f   : > { %596 = vmatmul.mubr.bf16.gmra.mrb[4].mxu0 %v1529_v22  ;;  %660 = vmatmul.mubr.bf16.gmra.mrb[4].mxu1 %v1530_v23 }
  0x80   : > { %603 = vmatprep.mubr.bf16.mxu0 %v1531_v24  ;;  %667 = vmatprep.mubr.bf16.mxu1 %v1533_v25 }
  0x87   : > { %604 = vmatmul.mubr.bf16.gmra.mrb[8].mxu0 %v1535_v26  ;;  %668 = vmatmul.mubr.bf16.gmra.mrb[8].mxu1 %v1536_v27 }
  0x88   : > { %611 = vmatprep.mubr.bf16.mxu0 %v1537_v28  ;;  %675 = vmatprep.mubr.bf16.mxu1 %v1539_v29 }
  0x8f   : > { %612 = vmatmul.mubr.bf16.gmra.mrb[12].mxu0 %v1541_v30  ;;  %676 = vmatmul.mubr.bf16.gmra.mrb[12].mxu1 %v1542_v31 }
  0x90   : > { %619 = vmatprep.mubr.bf16.mxu0 %v1543_v32  ;;  %683 = vmatprep.mubr.bf16.mxu1 %v1545_v33 }
  0x97   : > { %620 = vmatmul.mubr.bf16.gmra.mrb[16].mxu0 %v1547_v34  ;;  %684 = vmatmul.mubr.bf16.gmra.mrb[16].mxu1 %v1548_v35 }
  0x98   : > { %627 = vmatprep.mubr.bf16.mxu0 %v1549_v36  ;;  %691 = vmatprep.mubr.bf16.mxu1 %v1551_v37 }
  0x9f   : > { %628 = vmatmul.mubr.bf16.gmra.mrb[20].mxu0 %v1553_v38  ;;  %692 = vmatmul.mubr.bf16.gmra.mrb[20].mxu1 %v1554_v39 }
  0xa0   : > { %635 = vmatprep.mubr.bf16.mxu0 %v1555_v40  ;;  %699 = vmatprep.mubr.bf16.mxu1 %v1557_v41 }
  0xa7   : > { %636 = vmatmul.mubr.bf16.gmra.mrb[24].mxu0 %v1559_v42  ;;  %700 = vmatmul.mubr.bf16.gmra.mrb[24].mxu1 %v1560_v43 }
  0xa8   : > { %643 = vmatprep.mubr.bf16.mxu0 %v1561_v44  ;;  %707 = vmatprep.mubr.bf16.mxu1 %v1563_v45 }
  0xaf   : > { %644 = vmatmul.mubr.bf16.gmra.mrb[28].mxu0 %v1565_v46  ;;  %708 = vmatmul.mubr.bf16.gmra.mrb[28].mxu1 %v1566_v47 }
 0x14a   : > { %v1328_v48 = vpop.f32.mrb[0].mxu0  ;;  %v1376_v49 = vpop.f32.mrb[0].mxu1 }
 0x14b   : > { %v1329_v50 = vpop.f32.mrb[1].mxu0  ;;  %v1377_v52 = vpop.f32.mrb[1].mxu1 }
 0x14c   : > { %v1330_v53 = vadd.f32 %v1329_v50, %v1328_v48  ;;  %v1378_v54 = vadd.f32 %v1377_v52, %v1376_v49  ;;  %v1331_v55 = vpop.f32.mrb[2].mxu0  ;;  %v1379_v56 = vpop.f32.mrb[2].mxu1 }
 0x14d   : > { %v1332_v58 = vpop.f32.mrb[3].mxu0  ;;  %v1380_v59 = vpop.f32.mrb[3].mxu1 }
 0x14e   : > { %v723_v60 = vmul.f32 %v1330_v53, %v1911_v51  ;;  %v739_v61 = vmul.f32 %v1378_v54, %v1911_v51  ;;  %v1333_v62 = vadd.f32 %v1332_v58, %v1331_v55  ;;  %v1381_v63 = vadd.f32 %v1380_v59, %v1379_v56 }
 0x150   : > { %v762_v0 = vadd.f32 %v1916_v57, %v723_v60  ;;  %v778_v1 = vadd.f32 %v1916_v57, %v739_v61  ;;  %v724_v2 = vmul.f32 %v1333_v62, %v1911_v51  ;;  %v740_v3 = vmul.f32 %v1381_v63, %v1911_v51 }
 0x152   : > { %v763_v4 = vadd.f32 %v1916_v57, %v724_v2  ;;  %v779_v5 = vadd.f32 %v1916_v57, %v740_v3  ;;  %v1334_v6 = vpop.f32.mrb[4].mxu0  ;;  %v1382_v7 = vpop.f32.mrb[4].mxu1  ;;  %v794_v8 = vmax.f32 %v762_v0, 0.0  ;;  %v810_v9 = vmax.f32 %v778_v1, 0.0 }
 0x153   : > { %v1335_v10 = vpop.f32.mrb[5].mxu0  ;;  %v1383_v11 = vpop.f32.mrb[5].mxu1 }
 0x154   : > { %v795_v12 = vmax.f32 %v763_v4, 0.0  ;;  %v811_v13 = vmax.f32 %v779_v5, 0.0  ;;  %v1336_v14 = vadd.f32 %v1335_v10, %v1334_v6  ;;  %v1384_v15 = vadd.f32 %v1383_v11, %v1382_v7  ;;  %v1337_v16 = vpop.f32.mrb[6].mxu0  ;;  %v1385_v17 = vpop.f32.mrb[6].mxu1 }
 0x155   : > { %v1338_v18 = vpop.f32.mrb[7].mxu0  ;;  %v1386_v19 = vpop.f32.mrb[7].mxu1 }
 0x156   : > { %v1220_v20 = vpack.c.bf16 %v795_v12, %v794_v8  ;;  %v1260_v21 = vpack.c.bf16 %v811_v13, %v810_v9  ;;  %v725_v22 = vmul.f32 %v1336_v14, %v1911_v51  ;;  %v741_v23 = vmul.f32 %v1384_v15, %v1911_v51 }
 0x157   : > { %v1339_v24 = vadd.f32 %v1338_v18, %v1337_v16  ;;  %v1387_v25 = vadd.f32 %v1386_v19, %v1385_v17 }
 0x158   : > { %1221 = vst [vmem:[%s1929_s10] sm:$0xff] %v1220_v20   ;;  %1304 = vst [vmem:[%s1929_s10 + $0x40] sm:$0xff] %v1260_v21   ;;  %v764_v26 = vadd.f32 %v1916_v57, %v725_v22  ;;  %v780_v27 = vadd.f32 %v1916_v57, %v741_v23 }
 0x159   : > { %v726_v28 = vmul.f32 %v1339_v24, %v1911_v51  ;;  %v742_v29 = vmul.f32 %v1387_v25, %v1911_v51 }
 0x15a   : > { %v1340_v30 = vpop.f32.mrb[8].mxu0  ;;  %v1388_v31 = vpop.f32.mrb[8].mxu1  ;;  %v796_v40 = vmax.f32 %v764_v26, 0.0  ;;  %v812_v41 = vmax.f32 %v780_v27, 0.0 }
 0x15b   : > { %v765_v32 = vadd.f32 %v1916_v57, %v726_v28  ;;  %v781_v33 = vadd.f32 %v1916_v57, %v742_v29  ;;  %v1341_v34 = vpop.f32.mrb[9].mxu0  ;;  %v1389_v35 = vpop.f32.mrb[9].mxu1 }
 0x15c   : > { %v1342_v36 = vadd.f32 %v1341_v34, %v1340_v30  ;;  %v1390_v37 = vadd.f32 %v1389_v35, %v1388_v31  ;;  %v1343_v38 = vpop.f32.mrb[10].mxu0  ;;  %v1391_v39 = vpop.f32.mrb[10].mxu1 }
 0x15d   : > { %v797_v42 = vmax.f32 %v765_v32, 0.0  ;;  %v813_v43 = vmax.f32 %v781_v33, 0.0  ;;  %v1344_v44 = vpop.f32.mrb[11].mxu0  ;;  %v1392_v45 = vpop.f32.mrb[11].mxu1 }
 0x15e   : > { %v727_v46 = vmul.f32 %v1342_v36, %v1911_v51  ;;  %v743_v47 = vmul.f32 %v1390_v37, %v1911_v51  ;;  %v1345_v48 = vadd.f32 %v1344_v44, %v1343_v38  ;;  %v1393_v49 = vadd.f32 %v1392_v45, %v1391_v39 }
 0x15f   : > { %v1225_v50 = vpack.c.bf16 %v797_v42, %v796_v40  ;;  %v1265_v52 = vpack.c.bf16 %v813_v43, %v812_v41 }
 0x160   : > { %v766_v53 = vadd.f32 %v1916_v57, %v727_v46  ;;  %v782_v54 = vadd.f32 %v1916_v57, %v743_v47  ;;  %v728_v55 = vmul.f32 %v1345_v48, %v1911_v51  ;;  %v744_v56 = vmul.f32 %v1393_v49, %v1911_v51 }
 0x161   : > { %1297 = vst [vmem:[%s1929_s10 + $0x8] sm:$0xff] %v1225_v50   ;;  %1305 = vst [vmem:[%s1929_s10 + $0x48] sm:$0xff] %v1265_v52  }
 0x162   : > { %v767_v58 = vadd.f32 %v1916_v57, %v728_v55  ;;  %v783_v59 = vadd.f32 %v1916_v57, %v744_v56  ;;  %v1346_v60 = vpop.f32.mrb[12].mxu0  ;;  %v1394_v61 = vpop.f32.mrb[12].mxu1  ;;  %v798_v62 = vmax.f32 %v766_v53, 0.0  ;;  %v814_v63 = vmax.f32 %v782_v54, 0.0 }
 0x163   : > { %v1347_v0 = vpop.f32.mrb[13].mxu0  ;;  %v1395_v1 = vpop.f32.mrb[13].mxu1 }
 0x164   : > { %v799_v2 = vmax.f32 %v767_v58, 0.0  ;;  %v815_v3 = vmax.f32 %v783_v59, 0.0  ;;  %v1348_v4 = vadd.f32 %v1347_v0, %v1346_v60  ;;  %v1396_v5 = vadd.f32 %v1395_v1, %v1394_v61  ;;  %v1349_v6 = vpop.f32.mrb[14].mxu0  ;;  %v1397_v7 = vpop.f32.mrb[14].mxu1 }
 0x165   : > { %v1350_v8 = vpop.f32.mrb[15].mxu0  ;;  %v1398_v9 = vpop.f32.mrb[15].mxu1 }
 0x166   : > { %v1230_v10 = vpack.c.bf16 %v799_v2, %v798_v62  ;;  %v1270_v11 = vpack.c.bf16 %v815_v3, %v814_v63  ;;  %v729_v12 = vmul.f32 %v1348_v4, %v1911_v51  ;;  %v745_v13 = vmul.f32 %v1396_v5, %v1911_v51 }
 0x167   : > { %v1351_v14 = vadd.f32 %v1350_v8, %v1349_v6  ;;  %v1399_v15 = vadd.f32 %v1398_v9, %v1397_v7 }
 0x168   : > { %1298 = vst [vmem:[%s1929_s10 + $0x10] sm:$0xff] %v1230_v10   ;;  %1306 = vst [vmem:[%s1929_s10 + $0x50] sm:$0xff] %v1270_v11   ;;  %v768_v16 = vadd.f32 %v1916_v57, %v729_v12  ;;  %v784_v17 = vadd.f32 %v1916_v57, %v745_v13 }
 0x169   : > { %v730_v18 = vmul.f32 %v1351_v14, %v1911_v51  ;;  %v746_v19 = vmul.f32 %v1399_v15, %v1911_v51 }
 0x16a   : > { %v1352_v20 = vpop.f32.mrb[16].mxu0  ;;  %v1400_v21 = vpop.f32.mrb[16].mxu1  ;;  %v800_v30 = vmax.f32 %v768_v16, 0.0  ;;  %v816_v31 = vmax.f32 %v784_v17, 0.0 }
 0x16b   : > { %v769_v22 = vadd.f32 %v1916_v57, %v730_v18  ;;  %v785_v23 = vadd.f32 %v1916_v57, %v746_v19  ;;  %v1353_v24 = vpop.f32.mrb[17].mxu0  ;;  %v1401_v25 = vpop.f32.mrb[17].mxu1 }
 0x16c   : > { %v1354_v26 = vadd.f32 %v1353_v24, %v1352_v20  ;;  %v1402_v27 = vadd.f32 %v1401_v25, %v1400_v21  ;;  %v1355_v28 = vpop.f32.mrb[18].mxu0  ;;  %v1403_v29 = vpop.f32.mrb[18].mxu1 }
 0x16d   : > { %v801_v32 = vmax.f32 %v769_v22, 0.0  ;;  %v817_v33 = vmax.f32 %v785_v23, 0.0  ;;  %v1356_v34 = vpop.f32.mrb[19].mxu0  ;;  %v1404_v35 = vpop.f32.mrb[19].mxu1 }
 0x16e   : > { %v731_v36 = vmul.f32 %v1354_v26, %v1911_v51  ;;  %v747_v37 = vmul.f32 %v1402_v27, %v1911_v51  ;;  %v1357_v38 = vadd.f32 %v1356_v34, %v1355_v28  ;;  %v1405_v39 = vadd.f32 %v1404_v35, %v1403_v29 }
 0x16f   : > { %v1235_v40 = vpack.c.bf16 %v801_v32, %v800_v30  ;;  %v1275_v41 = vpack.c.bf16 %v817_v33, %v816_v31 }
 0x170   : > { %v770_v42 = vadd.f32 %v1916_v57, %v731_v36  ;;  %v786_v43 = vadd.f32 %v1916_v57, %v747_v37  ;;  %v732_v44 = vmul.f32 %v1357_v38, %v1911_v51  ;;  %v748_v45 = vmul.f32 %v1405_v39, %v1911_v51 }
 0x171   : > { %1299 = vst [vmem:[%s1929_s10 + $0x18] sm:$0xff] %v1235_v40   ;;  %1307 = vst [vmem:[%s1929_s10 + $0x58] sm:$0xff] %v1275_v41  }
 0x172   : > { %v771_v46 = vadd.f32 %v1916_v57, %v732_v44  ;;  %v787_v47 = vadd.f32 %v1916_v57, %v748_v45  ;;  %v1358_v48 = vpop.f32.mrb[20].mxu0  ;;  %v1406_v49 = vpop.f32.mrb[20].mxu1  ;;  %v802_v50 = vmax.f32 %v770_v42, 0.0  ;;  %v818_v52 = vmax.f32 %v786_v43, 0.0 }
 0x173   : > { %v1359_v53 = vpop.f32.mrb[21].mxu0  ;;  %v1407_v54 = vpop.f32.mrb[21].mxu1 }
 0x174   : > { %v803_v55 = vmax.f32 %v771_v46, 0.0  ;;  %v819_v56 = vmax.f32 %v787_v47, 0.0  ;;  %v1360_v58 = vadd.f32 %v1359_v53, %v1358_v48  ;;  %v1408_v59 = vadd.f32 %v1407_v54, %v1406_v49  ;;  %v1361_v60 = vpop.f32.mrb[22].mxu0  ;;  %v1409_v61 = vpop.f32.mrb[22].mxu1 }
 0x175   : > { %v1362_v62 = vpop.f32.mrb[23].mxu0  ;;  %v1410_v63 = vpop.f32.mrb[23].mxu1 }
 0x176   : > { %v1240_v0 = vpack.c.bf16 %v803_v55, %v802_v50  ;;  %v1280_v1 = vpack.c.bf16 %v819_v56, %v818_v52  ;;  %v733_v2 = vmul.f32 %v1360_v58, %v1911_v51  ;;  %v749_v3 = vmul.f32 %v1408_v59, %v1911_v51 }
 0x177   : > { %v1363_v4 = vadd.f32 %v1362_v62, %v1361_v60  ;;  %v1411_v5 = vadd.f32 %v1410_v63, %v1409_v61 }
 0x178   : > { %1300 = vst [vmem:[%s1929_s10 + $0x20] sm:$0xff] %v1240_v0   ;;  %1308 = vst [vmem:[%s1929_s10 + $0x60] sm:$0xff] %v1280_v1   ;;  %v772_v6 = vadd.f32 %v1916_v57, %v733_v2  ;;  %v788_v7 = vadd.f32 %v1916_v57, %v749_v3 }
 0x179   : > { %v734_v8 = vmul.f32 %v1363_v4, %v1911_v51  ;;  %v750_v9 = vmul.f32 %v1411_v5, %v1911_v51 }
 0x17a   : > { %v1364_v10 = vpop.f32.mrb[24].mxu0  ;;  %v1412_v11 = vpop.f32.mrb[24].mxu1  ;;  %v804_v20 = vmax.f32 %v772_v6, 0.0  ;;  %v820_v21 = vmax.f32 %v788_v7, 0.0 }
 0x17b   : > { %v773_v12 = vadd.f32 %v1916_v57, %v734_v8  ;;  %v789_v13 = vadd.f32 %v1916_v57, %v750_v9  ;;  %v1365_v14 = vpop.f32.mrb[25].mxu0  ;;  %v1413_v15 = vpop.f32.mrb[25].mxu1 }
 0x17c   : > { %v1366_v16 = vadd.f32 %v1365_v14, %v1364_v10  ;;  %v1414_v17 = vadd.f32 %v1413_v15, %v1412_v11  ;;  %v1367_v18 = vpop.f32.mrb[26].mxu0  ;;  %v1415_v19 = vpop.f32.mrb[26].mxu1 }
 0x17d   : > { %v805_v22 = vmax.f32 %v773_v12, 0.0  ;;  %v821_v23 = vmax.f32 %v789_v13, 0.0  ;;  %v1368_v24 = vpop.f32.mrb[27].mxu0  ;;  %v1416_v25 = vpop.f32.mrb[27].mxu1 }
 0x17e   : > { %v735_v26 = vmul.f32 %v1366_v16, %v1911_v51  ;;  %v751_v27 = vmul.f32 %v1414_v17, %v1911_v51  ;;  %v1369_v28 = vadd.f32 %v1368_v24, %v1367_v18  ;;  %v1417_v29 = vadd.f32 %v1416_v25, %v1415_v19 }
 0x17f   : > { %v1245_v30 = vpack.c.bf16 %v805_v22, %v804_v20  ;;  %v1285_v31 = vpack.c.bf16 %v821_v23, %v820_v21 }
 0x180   : > { %v774_v32 = vadd.f32 %v1916_v57, %v735_v26  ;;  %v790_v33 = vadd.f32 %v1916_v57, %v751_v27  ;;  %v736_v34 = vmul.f32 %v1369_v28, %v1911_v51  ;;  %v752_v35 = vmul.f32 %v1417_v29, %v1911_v51 }
 0x181   : > { %1301 = vst [vmem:[%s1929_s10 + $0x28] sm:$0xff] %v1245_v30   ;;  %1309 = vst [vmem:[%s1929_s10 + $0x68] sm:$0xff] %v1285_v31  }
 0x182   : > { %v775_v36 = vadd.f32 %v1916_v57, %v736_v34  ;;  %v791_v37 = vadd.f32 %v1916_v57, %v752_v35  ;;  %v1370_v38 = vpop.f32.mrb[28].mxu0  ;;  %v1418_v39 = vpop.f32.mrb[28].mxu1  ;;  %v806_v40 = vmax.f32 %v774_v32, 0.0  ;;  %v822_v41 = vmax.f32 %v790_v33, 0.0 }
 0x183   : > { %v1371_v42 = vpop.f32.mrb[29].mxu0  ;;  %v1419_v43 = vpop.f32.mrb[29].mxu1 }
 0x184   : > { %v807_v44 = vmax.f32 %v775_v36, 0.0  ;;  %v823_v45 = vmax.f32 %v791_v37, 0.0  ;;  %v1372_v46 = vadd.f32 %v1371_v42, %v1370_v38  ;;  %v1420_v47 = vadd.f32 %v1419_v43, %v1418_v39  ;;  %v1373_v48 = vpop.f32.mrb[30].mxu0  ;;  %v1421_v49 = vpop.f32.mrb[30].mxu1 }
 0x185   : > { %v1374_v50 = vpop.f32.mrb[31].mxu0  ;;  %v1422_v52 = vpop.f32.mrb[31].mxu1 }
 0x186   : > { %v1250_v53 = vpack.c.bf16 %v807_v44, %v806_v40  ;;  %v1290_v54 = vpack.c.bf16 %v823_v45, %v822_v41  ;;  %v737_v55 = vmul.f32 %v1372_v46, %v1911_v51  ;;  %v753_v56 = vmul.f32 %v1420_v47, %v1911_v51 }
 0x187   : > { %v1375_v58 = vadd.f32 %v1374_v50, %v1373_v48  ;;  %v1423_v59 = vadd.f32 %v1422_v52, %v1421_v49 }
 0x188   : > { %1302 = vst [vmem:[%s1929_s10 + $0x30] sm:$0xff] %v1250_v53   ;;  %1310 = vst [vmem:[%s1929_s10 + $0x70] sm:$0xff] %v1290_v54   ;;  %v776_v60 = vadd.f32 %v1916_v57, %v737_v55  ;;  %v792_v61 = vadd.f32 %v1916_v57, %v753_v56 }
 0x189   : > { %v738_v62 = vmul.f32 %v1375_v58, %v1911_v51  ;;  %v754_v63 = vmul.f32 %v1423_v59, %v1911_v51 }
 0x18a   : > { %v808_v2 = vmax.f32 %v776_v60, 0.0  ;;  %v824_v3 = vmax.f32 %v792_v61, 0.0 }
 0x18b   : > { %v777_v0 = vadd.f32 %v1916_v57, %v738_v62  ;;  %v793_v1 = vadd.f32 %v1916_v57, %v754_v63 }
 0x18d   : > { %v809_v4 = vmax.f32 %v777_v0, 0.0  ;;  %v825_v5 = vmax.f32 %v793_v1, 0.0 }
 0x18f   : > { %v1255_v51 = vpack.c.bf16 %v809_v4, %v808_v2  ;;  %v1295_v6 = vpack.c.bf16 %v825_v5, %v824_v3 }
 0x191   : > { %1303 = vst [vmem:[%s1929_s10 + $0x38] sm:$0xff] %v1255_v51   ;;  %1311 = vst [vmem:[%s1929_s10 + $0x78] sm:$0xff] %v1295_v6  }
 0x192   : > { %1638 = shalt.err (!%p1635_p7)
}
 0x193   : > { %s1639_s20 = scalar_lea.hbm %s2004_s8, 2048  ;;  %s1643_s9 = scalar_lea.hbm %s2055_s4, 16384 }
 0x194   : > { %p1640_p9 = scmp.ne.s32.totalorder %s2004_s8, %s1639_s20  ;;  %p1644_p5 = scmp.lt.u32.totalorder %s2004_s8, %s2055_s4 }
 0x195   : > { %p1645_p10 = scmp.lt.u32.totalorder %s1643_s9, %s1639_s20  ;;  %p1647_p1 = scmp.lt.u32.totalorder %s1639_s20, %s2004_s8 }
 0x196   : > { %p1641_p11 = pnand %p1640_p9, %p1814_p12 }
 0x197   : > { %p1646_p2 = por %p1645_p10, %p1644_p5 }
 0x198   : > { %p1642_p0 = pneg %p1641_p11 }
 0x199   : > { %p1648_p4 = por %p1647_p1, %p1646_p2 }
 0x19b   : > { %p1649_p6 = pnand %p1648_p4, %p1642_p0 }
 0x19d   : > { %1652 = shalt.err (!%p1649_p6)
}
 0x19e   : > { %s1704_s10 = smov 64   ;;  %s1705_s6 = smov 4  }
 0x19f   : > { %1446 = dma.vmem_to_hbm [thread:$0]  (%p1814_p12), %s2006_s5, 2048, %s2004_s8, %s987_s19, %s1704_s10, %s1704_s10, %s1705_s6  }
 0x1a0 PF: > { %p1463_p8 = scmp.ge.s32.totalorder %s1695_s18, 2  ;;  %s1015_s7 = sand.u32 1, %s1683_s15  }
 0x1a1   : > { %p2070_p13 = scmp.ne.s32.totalorder %s2060_s22, 0  ;;  %s1016_s26 = scalar_lea.sflag [#allocation4], %s1015_s7 }
 0x1a3   : > { %p1457_p3 = pnand %p1463_p8, %p2070_p13 }
 0x1a5   : > { %1678 = dma.done.wait (!%p1457_p3), %s1016_s26, 2048  }
 0x1a6   : > { %1680 = vsyncadd (!%p1457_p3), %s1016_s26, 4294965248  ;;  %p18_p7 = scmp.ge.s32.totalorder %s1784_s27, 10   ;;  %s2071_s15 = smov %s1687_s16 }
 0x1a7   : > { %s2072_s16 = smov %s1691_s17  ;;  %s2073_s17 = smov %s1810_s24 }
 0x1a8   : > { %s2074_s18 = smov %s1784_s27  ;;  %20 = sbr.rel (!%p18_p7) target bundleno = 6 (0x6), region = 85 }
 0x1af   :  { %1021 = vsyncpa [#allocation3], 1 }
 0x1b0   :  { %1023 = vsyncpa [#allocation3 + $0x1], 1 }
 0x1b1   :  { %1024 = vsyncpa [#allocation6], 1 }
 0x1b2   :  { %1025 = vsyncpa [#allocation4], 1 }
 0x1b3   :  { %1027 = vsyncpa [#allocation4 + $0x1], 1 }

</bundles_post_ra>
